<compile_context>
chip_gen: v6e
topology: v6e:2x2x1
jax: 0.10.0
libtpu: 0.0.40
codegen_flags: <defaults>
</compile_context>

<pallas_src>
import jax
import jax.numpy as jnp
from jax.experimental import pallas as pl
from jax.experimental.pallas import tpu as pltpu

LANE = 128            # vreg lane width (last dim)
MAX_TILE_ROWS = 4096  # (4096, 128) f32 = 2 MiB per tile; multiple of 32 so it
                      # stays legal for 16-bit (16,128) and 8-bit (32,128) packing


def _sublane_rows(dtype) -> int:
    """Minimum sublane multiple for this dtype: 8 (f32), 16 (bf16), 32 (int8/fp8)."""
    itemsize = jnp.dtype(dtype).itemsize
    return max(8, 32 // max(itemsize, 1))


def _pick_tile_rows(rows: int, sublane: int) -> int:
    """Choose the row-tile size.

    - tiny inputs: one full-array block (legal even if rows % sublane != 0),
    - otherwise: at least 2 tiles (so v7x can shard across its 2 TensorCores),
      sublane-aligned, capped at MAX_TILE_ROWS.
    """
    if rows <= 64:
        return rows
    half = pl.cdiv(rows, 2)
    half = pl.cdiv(half, sublane) * sublane  # sublane-align up
    return min(MAX_TILE_ROWS, half)


def _affine_kernel(w_ref, b_ref, x_ref, o_ref):
    # w_ref, b_ref: (1,) f32 scalars in SMEM; x_ref, o_ref: (tile_r, 128) VMEM.
    w = w_ref[0]
    b = b_ref[0]
    x = x_ref[...].astype(jnp.float32)           # FMA in f32 (free; VPU has slack)
    o_ref[...] = (x * w + b).astype(o_ref.dtype)


def linear_forward(x, weight, bias):
    """x: (N, 1), weight: (1, 1), bias: (1,)  ->  (N, 1).  y = x @ W^T + b."""
    n, in_features = x.shape
    assert in_features == 1 and weight.shape == (1, 1) and bias.shape == (1,)
    dtype = x.dtype

    w32 = weight.reshape(1).astype(jnp.float32)
    b32 = bias.reshape(1).astype(jnp.float32)

    total = n * in_features
    flat = x.reshape(-1)               # metadata-only
    rows = total // LANE               # number of complete 128-wide lane rows
    main_total = rows * LANE

    parts = []

    if rows > 0:
        # Zero-copy when N is 128-aligned; otherwise a prefix slice (ragged path).
        main_flat = flat if main_total == total else flat[:main_total]
        x2d = main_flat.reshape(rows, LANE)     # metadata-only

        sublane = _sublane_rows(dtype)
        tile_r = _pick_tile_rows(rows, sublane)
        grid = (pl.cdiv(rows, tile_r),)         # Pallas masks the ragged last block

        out2d = pl.pallas_call(
            _affine_kernel,
            out_shape=jax.ShapeDtypeStruct((rows, LANE), dtype),
            grid=grid,
            in_specs=[
                pl.BlockSpec(memory_space=pltpu.MemorySpace.SMEM),   # weight scalar
                pl.BlockSpec(memory_space=pltpu.MemorySpace.SMEM),   # bias scalar
                pl.BlockSpec((tile_r, LANE), lambda i: (i, 0)),      # x tiles
            ],
            out_specs=pl.BlockSpec((tile_r, LANE), lambda i: (i, 0)),
            compiler_params=pltpu.CompilerParams(
                # Shards row-tiles across TensorCores on v7x; no-op on v5e/v6e.
                dimension_semantics=("parallel",)),
        )(w32, b32, x2d)
        parts.append(out2d.reshape(-1))

    if main_total < total:
        # <128-element tail: one vreg of plain jnp work — no pad of the bulk array.
        tail = flat[main_total:].astype(jnp.float32)
        parts.append((tail * w32[0] + b32[0]).astype(dtype))

    out_flat = parts[0] if len(parts) == 1 else jnp.concatenate(parts)
    return out_flat.reshape(n, in_features)


if __name__ == "__main__":
    key = jax.random.PRNGKey(0)
    kx1, kx2, kx3, kw, kb = jax.random.split(key, 5)

    # Parameters matching torch.nn.Linear(1, 1) shapes.
    weight = jax.random.uniform(kw, (1, 1), jnp.float32, minval=-1.0, maxval=1.0)
    bias = jax.random.uniform(kb, (1,), jnp.float32, minval=-1.0, maxval=1.0)

    def ref(x):
        return x @ weight.T + bias

    # 128-aligned batch: zero-copy fast path (kernel does all the work).
    x_aligned = jax.random.normal(kx1, (256, 1), jnp.float32)
    y_aligned = jax.block_until_ready(linear_forward(x_aligned, weight, bias))
    assert y_aligned.shape == (256, 1)
    assert jnp.allclose(y_aligned, ref(x_aligned), atol=1e-6), "mismatch (N=256)"

    # Non-128-aligned batch: kernel on the aligned prefix + jnp tail epilogue.
    x_ragged = jax.random.normal(kx2, (300, 1), jnp.float32)
    y_ragged = jax.block_until_ready(linear_forward(x_ragged, weight, bias))
    assert jnp.allclose(y_ragged, ref(x_ragged), atol=1e-6), "mismatch (N=300)"

    # Tiny batch (< 128): pure epilogue path.
    x_small = jax.random.normal(kx3, (8, 1), jnp.float32)
    y_small = jax.block_until_ready(linear_forward(x_small, weight, bias))
    assert jnp.allclose(y_small, ref(x_small), atol=1e-6), "mismatch (N=8)"

    print("KERNEL_OK")
</pallas_src>

<mosaic_0001>
module attributes {stable_mosaic.version = 11 : i64} {
  func.func @_affine_kernel(%arg0: i32, %arg1: memref<1xf32, #tpu.memory_space<smem>>, %arg2: memref<1xf32, #tpu.memory_space<smem>>, %arg3: memref<2x128xf32, #tpu.memory_space<vmem>>, %arg4: memref<2x128xf32, #tpu.memory_space<vmem>>) attributes {dimension_semantics = [#tpu.dimension_semantics<parallel>], iteration_bounds = array<i64: 1>, scalar_prefetch = 0 : i64, scratch_operands = 0 : i64, tpu.core_type = #tpu.core_type<tc>, window_params = [{transform_indices = @transform_0, window_bounds = array<i64: 1>}, {transform_indices = @transform_1, window_bounds = array<i64: 1>}, {transform_indices = @transform_2, window_bounds = array<i64: 2, 128>}, {transform_indices = @transform_3, window_bounds = array<i64: 2, 128>}]} {
    %c0 = arith.constant 0 : index
    %0 = memref.load %arg1[%c0] : memref<1xf32, #tpu.memory_space<smem>>
    %c0_0 = arith.constant 0 : index
    %1 = memref.load %arg2[%c0_0] : memref<1xf32, #tpu.memory_space<smem>>
    %c0_1 = arith.constant 0 : index
    %c0_2 = arith.constant 0 : index
    %2 = vector.load %arg3[%c0_1, %c0_2] : memref<2x128xf32, #tpu.memory_space<vmem>>, vector<2x128xf32>
    %3 = vector.broadcast %0 : f32 to vector<2x128xf32>
    %4 = arith.mulf %2, %3 : vector<2x128xf32>
    %5 = vector.broadcast %1 : f32 to vector<2x128xf32>
    %6 = arith.addf %4, %5 : vector<2x128xf32>
    %c0_3 = arith.constant 0 : index
    %c0_4 = arith.constant 0 : index
    %7 = vector.load %arg4[%c0_3, %c0_4] : memref<2x128xf32, #tpu.memory_space<vmem>>, vector<2x128xf32>
    tpu.vector_store %arg4[%c0_3, %c0_4], %6 {strides = array<i32>} : memref<2x128xf32, #tpu.memory_space<vmem>>, vector<2x128xf32>,
    return
  }
  func.func @transform_0(%arg0: i32) -> i32 {
    %c0_i32 = arith.constant 0 : i32
    %c0_i32_0 = arith.constant 0 : i32
    return %c0_i32 : i32
  }
  func.func @transform_1(%arg0: i32) -> i32 {
    %c0_i32 = arith.constant 0 : i32
    %c0_i32_0 = arith.constant 0 : i32
    return %c0_i32 : i32
  }
  func.func @transform_2(%arg0: i32) -> (i32, i32) {
    %c0_i32 = arith.constant 0 : i32
    %c0_i32_0 = arith.constant 0 : i32
    return %arg0, %c0_i32 : i32, i32
  }
  func.func @transform_3(%arg0: i32) -> (i32, i32) {
    %c0_i32 = arith.constant 0 : i32
    %c0_i32_0 = arith.constant 0 : i32
    return %arg0, %c0_i32 : i32, i32
  }
}

</mosaic_0001>

<bundles_post_ra>
// kernel: tpu_custom_call.1
= control target key start
LH: loop header
LB: loop body
LE: loop exit
PB: predicated region body
PF: predicated region fallthrough
CT: control target
= control target key end

     0   :  { %s95_s0 = inlined_call_operand.<no memory space> [shape: f32[1], index: 0, kind: input, shape index: {}]   ;;  %s96_s1 = inlined_call_operand.<no memory space> [shape: f32[1], index: 1, kind: input, shape index: {}]   ;;  %s97_s2 = inlined_call_operand.vmem [shape: f32[2,128], index: 2, kind: input, shape index: {}]   ;;  %s98_s3 = inlined_call_operand.hbm [shape: f32[2,128], index: 3, kind: output, shape index: {}]  }
   0x1   :  { %v19_v0 = vld [vmem:[%s97_s2] sm:$0x3]  ;;  %v20_v1 = vstv %s95_s0  ;;  %v22_v2 = vstv %s96_s1 }
   0x2   :  { %10 = vsyncpa [#allocation5], 0  ;;  %v21_v3 = vmul.f32 %v20_v1, %v19_v0  ;;  %s62_s18 = smov [#allocation4]  }
   0x3   :  { %s31_s19 = sshll.u32 %s62_s18, 4  ;;  %s32_s19 = int_to_ptr.vmem [resolvable:$true] %s31_s19 }
   0x4   :  { %v23_v4 = vadd.f32 %v22_v2, %v21_v3  ;;  %s40_s20 = scalar_lea.vmem %s32_s19, 32  ;;  %p45_p1 = scmp.lt.s32.totalorder %s32_s19, %s32_s19 }
   0x5   :  { %p41_p0 = scmp.ne.s32.totalorder %s32_s19, %s40_s20  ;;  %p46_p2 = scmp.lt.s32.totalorder %s40_s20, %s40_s20 }
   0x6   :  { %24 = vst [vmem:[#allocation4] sm:$0x3] %v23_v4 }
   0x7   :  { %p47_p3 = por %p46_p2, %p45_p1 }
   0x9   :  { %p48_p4 = pnand %p47_p3, %p41_p0 }
   0xb   :  { %51 = shalt.err (!%p48_p4)
}
   0xc   :  { %34 = dma.vmem_to_hbm [thread:$0]  %s32_s19, 32, %s98_s3, [#allocation5]  }
   0xd   :  { %60 = dma.done.wait [#allocation5], 32  }
   0xe   :  { %61 = vsyncadd [#allocation5], 4294967264 }
   0xf   :  { %38 = vsyncpa [#allocation5], 1 }

</bundles_post_ra>
